<compile_context>
chip_gen: v7x
topology: tpu7x:2x2x1
jax: 0.10.0
libtpu: 0.0.40
codegen_flags: <defaults>
</compile_context>

<pallas_src>
import functools

import jax
import jax.numpy as jnp
from jax.experimental import pallas as pl
from jax.experimental.pallas import tpu as pltpu

LANE = 128
SUBLANE = 8


def _round_up(n, m):
    return ((n + m - 1) // m) * m


def _cdiv(a, b):
    return (a + b - 1) // b


def rbfn_kernel(xt_ref, cs_ref, cc_ref, nbeta_ref, w_ref, b_ref, o_ref):
    # xt_ref:    (D, tm)   x^T tile, streamed (lanes = batch)
    # cs_ref:    (Cp, D)   centers pre-scaled by 2*beta, zero-padded (resident)
    # cc_ref:    (Cp, 1)   -beta * ||c||^2 column, zero for padded rows
    # nbeta_ref: (1, 1)    -beta scalar in SMEM (used only on the xx row)
    # w_ref:     (Op, Cp)  linear weight, zero-padded (resident)
    # b_ref:     (Op, 1)   bias column, zero-padded (resident)
    # o_ref:     (Op, tm)  out^T tile (lane-dense, tm % 128 == 0)
    xt = xt_ref[...]
    # -beta * ||x||^2 per batch column: VPU square + XLU sublane-reduce,
    # then a single (1, tm) scalar multiply.
    xx = nbeta_ref[0, 0] * jnp.sum(xt * xt, axis=0, keepdims=True)       # (1, tm)
    # 2*beta * (c . x) via MXU (beta pre-folded into cs).
    xc = jnp.dot(cs_ref[...], xt, preferred_element_type=jnp.float32)    # (Cp, tm)
    # s = -beta * ||x - c||^2  (<= 0 for beta > 0); clamp guards f32 cancellation.
    s = jnp.minimum(xc + cc_ref[...] + xx, 0.0)
    rbf = jnp.exp(s)                                                     # EUP exp
    out = jnp.dot(w_ref[...], rbf, preferred_element_type=jnp.float32) + b_ref[...]
    o_ref[...] = out.astype(o_ref.dtype)


@functools.partial(jax.jit, static_argnames=("max_tm",))
def rbfn_forward(x, centers, beta, weight, bias, *, max_tm=2048):
    """RBFN forward.

    x:       (N, D)  input batch
    centers: (C, D)  RBF centers
    beta:    scalar / (1,) RBF width (positive, as initialized in the module)
    weight:  (O, C)  nn.Linear weight
    bias:    (O,)    nn.Linear bias
    returns  (N, O)  float32
    """
    N, D = x.shape
    C = centers.shape[0]
    O = weight.shape[0]
    f32 = jnp.float32

    # Tiny center / output dims pad only to 8 sublanes (not 128 lanes).
    Cp = _round_up(C, SUBLANE)
    Op = _round_up(O, SUBLANE)

    # Batch tile: multiple of 128 lanes; aim for >= 2 grid steps so v7x can
    # shard across both TensorCores; cap at max_tm.
    N128 = _round_up(N, LANE)
    if N128 > LANE:
        tm = min(max_tm, _round_up(_cdiv(N128, 2), LANE))
    else:
        tm = LANE
    tm = max(tm, LANE)
    Np = _round_up(N128, tm)

    # x^T, padded on the lane (batch) axis only when needed.
    xt = x.astype(f32).T                                       # (D, N)
    if Np != N:
        xt = jnp.pad(xt, ((0, 0), (0, Np - N)))                # (D, Np)

    beta_s = jnp.asarray(beta, f32).reshape(())
    c_p = jnp.zeros((Cp, D), f32).at[:C, :].set(centers.astype(f32))
    cs = (2.0 * beta_s) * c_p                                  # (Cp, D)
    cc = (-beta_s) * jnp.sum(c_p * c_p, axis=1, keepdims=True)  # (Cp, 1)
    w_p = jnp.zeros((Op, Cp), f32).at[:O, :C].set(weight.astype(f32))
    b_p = jnp.zeros((Op, 1), f32).at[:O, 0].set(bias.astype(f32))
    neg_beta = (-beta_s).reshape(1, 1)

    # VMEM: double-buffered streamed x^T / out^T tiles + tiny resident consts.
    vmem_bytes = 4 * (2 * D * tm + 2 * Op * tm + Cp * D + Cp + Op * Cp + Op)
    vmem_limit = int(min(32 * 1024 * 1024, max(8 * vmem_bytes, 2 * 1024 * 1024)))

    cost = pl.CostEstimate(
        flops=2 * Np * Cp * D + 2 * Np * Cp * Op,
        transcendentals=Np * Cp,
        bytes_accessed=4 * (D * Np + Op * Np + Cp * D + Cp + Op * Cp + Op),
    )

    out_t = pl.pallas_call(
        rbfn_kernel,
        out_shape=jax.ShapeDtypeStruct((Op, Np), f32),
        grid_spec=pltpu.PrefetchScalarGridSpec(
            num_scalar_prefetch=0,
            grid=(Np // tm,),
            in_specs=[
                pl.BlockSpec((D, tm), lambda i: (0, i)),      # x^T: streamed
                pl.BlockSpec((Cp, D), lambda i: (0, 0)),      # 2*beta*centers
                pl.BlockSpec((Cp, 1), lambda i: (0, 0)),      # -beta*||c||^2
                pl.BlockSpec(memory_space=pltpu.MemorySpace.SMEM),  # -beta
                pl.BlockSpec((Op, Cp), lambda i: (0, 0)),     # weight
                pl.BlockSpec((Op, 1), lambda i: (0, 0)),      # bias
            ],
            out_specs=pl.BlockSpec((Op, tm), lambda i: (0, i)),
        ),
        compiler_params=pltpu.CompilerParams(
            dimension_semantics=("parallel",),
            vmem_limit_bytes=vmem_limit,
        ),
        cost_estimate=cost,
    )(xt, cs, cc, neg_beta, w_p, b_p)

    # Strip padding and return in (N, O) layout.
    return out_t[:O, :N].T


def rbfn_reference(x, centers, beta, weight, bias):
    d2 = jnp.sum((x[:, None, :] - centers[None, :, :]) ** 2, axis=-1)
    rbf = jnp.exp(-jnp.asarray(beta).reshape(())[()] * d2)
    return rbf @ weight.T + bias


if __name__ == "__main__":
    # Small, module-consistent shapes.
    N = 16             # batch
    input_dim = 16
    num_centers = 10
    output_dim = 4

    key = jax.random.PRNGKey(0)
    kx, kc, kw, kb = jax.random.split(key, 4)

    # Input (StandardScaler is data preprocessing; use zero-mean/unit-variance
    # random data directly).
    x = jax.random.normal(kx, (N, input_dim), dtype=jnp.float32)

    # Parameter init matching the module's __init__ shapes:
    #   centers ~ randn(num_centers, input_dim), beta = 2.0,
    #   nn.Linear(num_centers, output_dim): weight (O, C), bias (O,)
    centers = jax.random.normal(kc, (num_centers, input_dim), dtype=jnp.float32)
    beta = jnp.full((1,), 2.0, dtype=jnp.float32)
    bound = 1.0 / float(num_centers) ** 0.5
    weight = jax.random.uniform(kw, (output_dim, num_centers),
                                minval=-bound, maxval=bound, dtype=jnp.float32)
    bias = jax.random.uniform(kb, (output_dim,),
                              minval=-bound, maxval=bound, dtype=jnp.float32)

    out = rbfn_forward(x, centers, beta, weight, bias)
    out = jax.block_until_ready(out)

    ref = rbfn_reference(x, centers, beta, weight, bias)
    assert out.shape == (N, output_dim)
    assert jnp.allclose(out, ref, atol=1e-5, rtol=1e-5), "mismatch vs reference"

    print("KERNEL_OK")
</pallas_src>

<mosaic_0001>
module attributes {stable_mosaic.version = 11 : i64} {
  func.func @rbfn_kernel(%arg0: i32, %arg1: memref<16x128xf32, #tpu.memory_space<vmem>>, %arg2: memref<16x16xf32, #tpu.memory_space<vmem>>, %arg3: memref<16x1xf32, #tpu.memory_space<vmem>>, %arg4: memref<1x1xf32, #tpu.memory_space<smem>>, %arg5: memref<8x16xf32, #tpu.memory_space<vmem>>, %arg6: memref<8x1xf32, #tpu.memory_space<vmem>>, %arg7: memref<8x128xf32, #tpu.memory_space<vmem>>) attributes {dimension_semantics = [#tpu.dimension_semantics<parallel>], iteration_bounds = array<i64: 1>, scalar_prefetch = 0 : i64, scratch_operands = 0 : i64, tpu.core_type = #tpu.core_type<tc>, window_params = [{transform_indices = @transform_0, window_bounds = array<i64: 16, 128>}, {pipeline_mode = #tpu.pipeline_mode<synchronous>, transform_indices = @transform_1, window_bounds = array<i64: 16, 16>}, {pipeline_mode = #tpu.pipeline_mode<synchronous>, transform_indices = @transform_2, window_bounds = array<i64: 16, 1>}, {transform_indices = @transform_3, window_bounds = array<i64: 1, 1>}, {pipeline_mode = #tpu.pipeline_mode<synchronous>, transform_indices = @transform_4, window_bounds = array<i64: 8, 16>}, {pipeline_mode = #tpu.pipeline_mode<synchronous>, transform_indices = @transform_5, window_bounds = array<i64: 8, 1>}, {transform_indices = @transform_6, window_bounds = array<i64: 8, 128>}]} {
    %c0 = arith.constant 0 : index
    %c0_0 = arith.constant 0 : index
    %0 = vector.load %arg1[%c0, %c0_0] : memref<16x128xf32, #tpu.memory_space<vmem>>, vector<16x128xf32>
    %c0_1 = arith.constant 0 : index
    %c0_2 = arith.constant 0 : index
    %1 = memref.load %arg4[%c0_1, %c0_2] : memref<1x1xf32, #tpu.memory_space<smem>>
    %2 = arith.mulf %0, %0 : vector<16x128xf32>
    %cst = arith.constant dense<0.000000e+00> : vector<128xf32>
    %3 = vector.multi_reduction <add>, %2, %cst [0] : vector<16x128xf32> to vector<128xf32>
    %4 = vector.shape_cast %3 : vector<128xf32> to vector<1x128xf32>
    %5 = vector.broadcast %1 : f32 to vector<1x128xf32>
    %6 = arith.mulf %5, %4 : vector<1x128xf32>
    %c0_3 = arith.constant 0 : index
    %c0_4 = arith.constant 0 : index
    %7 = vector.load %arg2[%c0_3, %c0_4] : memref<16x16xf32, #tpu.memory_space<vmem>>, vector<16x16xf32>
    %cst_5 = arith.constant dense<0.000000e+00> : vector<16x128xf32>
    %8 = tpu.matmul %7, %0, %cst_5 {dimension_numbers = #tpu.dot_dimension_numbers<[1], [0], [0], [1], [0, 0, 1, 1], [], []>} : vector<16x16xf32>, vector<16x128xf32>, vector<16x128xf32> -> vector<16x128xf32>
    %c0_6 = arith.constant 0 : index
    %c0_7 = arith.constant 0 : index
    %9 = vector.load %arg3[%c0_6, %c0_7] : memref<16x1xf32, #tpu.memory_space<vmem>>, vector<16x1xf32>
    %10 = vector.broadcast %9 : vector<16x1xf32> to vector<16x128xf32>
    %11 = arith.addf %8, %10 : vector<16x128xf32>
    %12 = vector.broadcast %6 : vector<1x128xf32> to vector<16x128xf32>
    %13 = arith.addf %11, %12 : vector<16x128xf32>
    %cst_8 = arith.constant 0.000000e+00 : f32
    %14 = vector.broadcast %cst_8 : f32 to vector<16x128xf32>
    %15 = arith.minimumf %13, %14 : vector<16x128xf32>
    %16 = math.exp %15 : vector<16x128xf32>
    %c0_9 = arith.constant 0 : index
    %c0_10 = arith.constant 0 : index
    %17 = vector.load %arg5[%c0_9, %c0_10] : memref<8x16xf32, #tpu.memory_space<vmem>>, vector<8x16xf32>
    %cst_11 = arith.constant dense<0.000000e+00> : vector<8x128xf32>
    %18 = tpu.matmul %17, %16, %cst_11 {dimension_numbers = #tpu.dot_dimension_numbers<[1], [0], [0], [1], [0, 0, 1, 1], [], []>} : vector<8x16xf32>, vector<16x128xf32>, vector<8x128xf32> -> vector<8x128xf32>
    %c0_12 = arith.constant 0 : index
    %c0_13 = arith.constant 0 : index
    %19 = vector.load %arg6[%c0_12, %c0_13] : memref<8x1xf32, #tpu.memory_space<vmem>>, vector<8x1xf32>
    %20 = vector.broadcast %19 : vector<8x1xf32> to vector<8x128xf32>
    %21 = arith.addf %18, %20 : vector<8x128xf32>
    %c0_14 = arith.constant 0 : index
    %c0_15 = arith.constant 0 : index
    %22 = vector.load %arg7[%c0_14, %c0_15] : memref<8x128xf32, #tpu.memory_space<vmem>>, vector<8x128xf32>
    tpu.vector_store %arg7[%c0_14, %c0_15], %21 {strides = array<i32>} : memref<8x128xf32, #tpu.memory_space<vmem>>, vector<8x128xf32>,
    return
  }
  func.func @transform_0(%arg0: i32) -> (i32, i32) {
    %c0_i32 = arith.constant 0 : i32
    %c0_i32_0 = arith.constant 0 : i32
    return %c0_i32, %arg0 : i32, i32
  }
  func.func @transform_1(%arg0: i32) -> (i32, i32) {
    %c0_i32 = arith.constant 0 : i32
    %c0_i32_0 = arith.constant 0 : i32
    %c0_i32_1 = arith.constant 0 : i32
    return %c0_i32, %c0_i32_0 : i32, i32
  }
  func.func @transform_2(%arg0: i32) -> (i32, i32) {
    %c0_i32 = arith.constant 0 : i32
    %c0_i32_0 = arith.constant 0 : i32
    %c0_i32_1 = arith.constant 0 : i32
    return %c0_i32, %c0_i32_0 : i32, i32
  }
  func.func @transform_3(%arg0: i32) -> (i32, i32) {
    %c0_i32 = arith.constant 0 : i32
    %c0_i32_0 = arith.constant 0 : i32
    %c0_i32_1 = arith.constant 0 : i32
    return %c0_i32, %c0_i32_0 : i32, i32
  }
  func.func @transform_4(%arg0: i32) -> (i32, i32) {
    %c0_i32 = arith.constant 0 : i32
    %c0_i32_0 = arith.constant 0 : i32
    %c0_i32_1 = arith.constant 0 : i32
    return %c0_i32, %c0_i32_0 : i32, i32
  }
  func.func @transform_5(%arg0: i32) -> (i32, i32) {
    %c0_i32 = arith.constant 0 : i32
    %c0_i32_0 = arith.constant 0 : i32
    %c0_i32_1 = arith.constant 0 : i32
    return %c0_i32, %c0_i32_0 : i32, i32
  }
  func.func @transform_6(%arg0: i32) -> (i32, i32) {
    %c0_i32 = arith.constant 0 : i32
    %c0_i32_0 = arith.constant 0 : i32
    return %c0_i32, %arg0 : i32, i32
  }
}

</mosaic_0001>

<bundles_post_ra>
// kernel: rbfn_forward.1
= control target key start
LH: loop header
LB: loop body
LE: loop exit
PB: predicated region body
PF: predicated region fallthrough
CT: control target
= control target key end

     0   :  { %vm52_vm0 = vcmask 130048   ;;  %v268_v3 = vmov 0   ;;  %v269_v11 = vmov 0.0|0.0   ;;  %vm270_vm1 = vmmov 0   ;;  %s340_s0 = inlined_call_operand.vmem [shape: f32[16,128], index: 0, kind: input, shape index: {}]   ;;  %s341_s1 = inlined_call_operand.vmem [shape: f32[16,16], index: 1, kind: input, shape index: {}]   ;;  %s342_s2 = inlined_call_operand.vmem [shape: f32[16,1], index: 2, kind: input, shape index: {}]   ;;  %s343_s5 = inlined_call_operand.vmem [shape: f32[8,1], index: 5, kind: input, shape index: {}]   ;;  %s344_s3 = inlined_call_operand.<no memory space> [shape: f32[1,1], index: 3, kind: input, shape index: {}]   ;;  %s345_s4 = inlined_call_operand.vmem [shape: f32[8,16], index: 4, kind: input, shape index: {}]   ;;  %s346_s6 = inlined_call_operand.vmem [shape: f32[8,128], index: 6, kind: output, shape index: {}]  }
   0x1   :  { %v24_v0 = vld [vmem:[%s340_s0] sm:$0xff]  ;;  %v25_v1 = vld [vmem:[%s340_s0 + $0x8] sm:$0xff]  ;;  %262 = vset.pattern.permute.xlu0 %v268_v3  ;;  %263 = vset.pattern.permute.xlu1 %v268_v3  ;;  %v271_v12 = vmov 0.0   ;;  %v36_v21 = vstv %s344_s3 }
   0x2   :  { %v38_v2 = vld [vmem:[%s341_s1] sm:$0xff]  ;;  %v27_v4 = vmul.f32 %v24_v0, %v24_v0  ;;  %v28_v5 = vmul.f32 %v25_v1, %v25_v1  ;;  %v251_v6 = vpack.c.bf16 %v25_v1, %v24_v0  ;;  %v41_v9 = vld [vmem:[%s342_s2 + $0x8] sm:$0xff]  ;;  %255 = vmatprep.subr.bf16.mxu1 %v269_v11  ;;  %248 = vmatprep.mubr.msk.f32.mxu1 %vm270_vm1, %v271_v12 }
   0x3   :  { %241 = vmatprep.mubr.msk.f32.mxu0 %vm52_vm0, %v38_v2  ;;  %v40_v7 = vld [vmem:[%s342_s2] sm:$0xff]  ;;  %v39_v10 = vld [vmem:[%s341_s1 + $0x8] sm:$0xff] }
   0x4   :  { %44 = vperm.xlu0 %262, %v40_v7   ;;  %v29_v8 = vadd.f32 %v28_v5, %v27_v4  ;;  %252 = vmatprep.subr.bf16.mxu0 %v251_v6  ;;  %v143_v13 = vld [vmem:[%s343_s5] sm:$0xff] }
   0x5   :  { %254 = vmatpush3.bf16.msra.mxu0 %v251_v6  ;;  %146 = vperm.xlu1 %263, %v143_v13   ;;  %v142_v37 = vld [vmem:[%s345_s4] sm:$0xff] }
   0x6   :  { %v30_v14 = vrot.slane %v29_v8, 4 }
   0x8   :  { %49 = vperm.xlu0 %262, %v41_v9   ;;  %242 = vmatmul.mubr.msk.f32.vlgmr.msra.gmra.mrb[0].mxu0 %vm52_vm0, %v39_v10  ;;  %v31_v15 = vadd.f32 %v30_v14, %v29_v8 }
   0xa   :  { %v32_v16 = vrot.slane %v31_v15, 2 }
   0xc   :  { %v33_v17 = vadd.f32 %v32_v16, %v31_v15 }
   0xe   :  { %v34_v18 = vrot.slane %v33_v17, 1 }
  0x10   :  { %v35_v20 = vadd.f32 %v34_v18, %v33_v17 }
  0x12   :  { %v37_v22 = vmul.f32 %v36_v21, %v35_v20 }
  0x83   :  { %v45_v19 = vpop.permute.xlu0 %44 }
  0x84   :  { %v147_v38 = vpop.permute.xlu1 %146 }
  0x87   :  { %v50_v23 = vpop.permute.xlu0 %49 }
  0xdb   :  { %v243_v24 = vpop.f32.mrb[0].mxu0 }
  0xdc   :  { %v131_v25 = vadd.f32 %v243_v24, %v50_v23  ;;  %v125_v26 = vpop.f32.mrb[1].mxu0 }
  0xdd   :  { %v126_v27 = vadd.f32 %v125_v26, %v45_v19 }
  0xde   :  { %v135_v28 = vadd.f32 %v131_v25, %v37_v22 }
  0xdf   :  { %v134_v29 = vadd.f32 %v126_v27, %v37_v22 }
  0xe0   :  { %v137_v30 = vmin.f32 %v135_v28, 0.0 }
  0xe1   :  { %v136_v31 = vmin.f32 %v134_v29, 0.0 }
  0xe2   :  { %v140_v32 = vmul.f32 1.442695, %v137_v30 }
  0xe3   :  { %v138_v33 = vmul.f32 1.442695, %v136_v31 }
  0xe4   :  { %264 = vpow2.f32 %v140_v32 }
  0xe5   :  { %266 = vpow2.f32 %v138_v33 }
  0xee   :  { %v265_v34 = vpop.eup %264 }
  0xef   :  { %v267_v35 = vpop.eup %266 }
  0xf0   :  { %v256_v36 = vpack.c.bf16 %v265_v34, %v267_v35 }
  0xf2   :  { %257 = vmatpush3.bf16.msra.mxu1 %v256_v36 }
  0xf5   :  { %249 = vmatmul.mubr.msk.f32.vlgmr.msra.gmra.mrb[0].mxu1 %vm52_vm0, %v142_v37 }
 0x1c8   :  { %v218_v39 = vpop.f32.mrb[0].mxu1 }
 0x1c9   :  { %v219_v40 = vadd.f32 %v218_v39, %v147_v38  ;;  %v250_v41 = vpop.f32.mrb[1].mxu1 }
 0x1cb   :  { %222 = vst [vmem:[%s346_s6] sm:$0xff] %v219_v40 }

</bundles_post_ra>
